<compile_context>
chip_gen: v7x
topology: tpu7x:2x2x1
jax: 0.10.0
libtpu: 0.0.40
codegen_flags: <defaults>
</compile_context>

<pallas_src>
import jax
import jax.numpy as jnp
from jax.experimental import pallas as pl
from jax.experimental.pallas import tpu as pltpu

# ----------------------------- small synthetic config ------------------------
B = 2            # batch size
T = 8            # text sequence length
DW = 32          # cfg['text-model']['word-dim']
D = 32           # cfg['model']['embed-dim']
D2 = D // 2      # embed-dim // 2
DF = 32          # cfg['image-model']['feat-dim']
G = 4            # cfg['image-model']['grid'] = (4, 4)
GG = G * G       # number of image regions
L = 8            # len(labels)
NEG_SLOPE = 0.1  # LeakyReLU(0.1)

# -------------------- packed parameter slab layout (rows x 128 lanes) ---------
LANES = 128
R_WSTACK = 0              # rows 0..63  : [w_text ; w_img] stacked  -> (DW+DF, D)
R_BIAS = 64               # single-row entries:
R_B_TEXT = R_BIAS + 0     #   b_text (D)
R_B_IMG = R_BIAS + 1      #   b_img  (D)
R_B_POS = R_BIAS + 2      #   b_pos  (DF)   (mean of the positional encoding)
R_B1 = R_BIAS + 3         #   b1     (D)
R_B2 = R_BIAS + 4         #   b2     (D2)
R_BH = R_BIAS + 5         #   b_head (L)
R_FW = R_BIAS + 6         #   FeatureWeightedLayer parameter (scalar, col 0)
R_W1 = 72                 # rows 72..103  : map_to_embed_1 weight (D, D)
R_W2 = 104                # rows 104..135 : map_to_embed_2 weight (D, D2)
R_WH = 136                # rows 136..151 : class-head weight     (D2, L)
SLAB_ROWS = 152           # multiple of 8


# ----------------------------- fused forward kernel --------------------------
def joint_encoder_kernel(text_ref,    # (B, T, DW)
                         image_ref,   # (B, DF, GG)   native layout, regions last
                         slab_ref,    # (SLAB_ROWS, 128) packed params
                         out_ref):    # (B, L)
    f32 = jnp.float32

    # ---- commute the token/region means through the affine maps (exact) -----
    # mean(linspace(-1,1,G)) == 0  =>  mean(coords) @ Wp == 0, so the positional
    # encoding contributes only its bias to the region mean.
    text_mean = jnp.mean(text_ref[...], axis=1)                 # (B, DW)
    img_mean = jnp.mean(image_ref[...], axis=-1)                # (B, DF)

    # ---- FeatureWeightedLayer gate (scalar parameter lives in the slab) -----
    fw = slab_ref[R_FW:R_FW + 1, 0:1]                           # (1, 1)
    alpha = jax.nn.sigmoid(fw)

    b_pos = slab_ref[R_B_POS:R_B_POS + 1, 0:DF]                 # (1, DF)

    # blended = alpha*(text_mean@Wt + bt) + (1-alpha)*((img_mean+b_pos)@Wi + bi)
    # done as ONE MXU push against the vertically stacked [Wt; Wi].
    x = jnp.concatenate(
        [text_mean * alpha, (img_mean + b_pos) * (1.0 - alpha)], axis=-1)  # (B, DW+DF)
    w_stack = slab_ref[R_WSTACK:R_WSTACK + DW + DF, 0:D]        # (DW+DF, D)
    b_text = slab_ref[R_B_TEXT:R_B_TEXT + 1, 0:D]               # (1, D)
    b_img = slab_ref[R_B_IMG:R_B_IMG + 1, 0:D]                  # (1, D)
    emb = jnp.dot(x, w_stack, preferred_element_type=f32)
    emb = emb + alpha * b_text + (1.0 - alpha) * b_img          # (B, D)

    # ---- map_to_embed_1 / map_to_embed_2 with LeakyReLU(0.1) ----------------
    w1 = slab_ref[R_W1:R_W1 + D, 0:D]
    b1 = slab_ref[R_B1:R_B1 + 1, 0:D]
    h = jnp.dot(emb, w1, preferred_element_type=f32) + b1
    h = jnp.where(h > 0, h, NEG_SLOPE * h)

    w2 = slab_ref[R_W2:R_W2 + D, 0:D2]
    b2 = slab_ref[R_B2:R_B2 + 1, 0:D2]
    h = jnp.dot(h, w2, preferred_element_type=f32) + b2
    h = jnp.where(h > 0, h, NEG_SLOPE * h)

    # ---- multi_label_class_head + sigmoid ------------------------------------
    wh = slab_ref[R_WH:R_WH + D2, 0:L]
    bh = slab_ref[R_BH:R_BH + 1, 0:L]
    logits = jnp.dot(h, wh, preferred_element_type=f32) + bh
    out_ref[...] = jax.nn.sigmoid(logits)                       # (B, L)


# ----------------------------- wrapper ----------------------------------------
@jax.jit
def weighted_joint_encoder(text, text_len, image, slab):
    # text_len is accepted for signature parity with the torch module but the
    # reference forward never reads it (mean is over all T tokens).
    del text_len
    bsz = text.shape[0]

    # image.view(bs, Df, -1): merging the trailing contiguous spatial dims is a
    # free bitcast (no transpose, no HBM round trip).  The kernel takes the
    # region mean over the last axis directly.
    img = image.reshape(bsz, image.shape[1], -1)                # (B, DF, GG)

    flops = 2 * bsz * ((DW + DF) * D + D * D + D * D2 + D2 * L)
    bytes_accessed = 4 * (text.size + img.size + slab.size + bsz * L)

    vmem = lambda: pl.BlockSpec(memory_space=pltpu.MemorySpace.VMEM)
    # TODO(synk): image=None branch (embeddings = text only) is not exercised
    # here; it would need a second, image-free kernel variant.
    return pl.pallas_call(
        joint_encoder_kernel,
        out_shape=jax.ShapeDtypeStruct((bsz, L), jnp.float32),
        in_specs=[vmem(), vmem(), vmem()],
        out_specs=vmem(),
        cost_estimate=pl.CostEstimate(
            flops=flops,
            transcendentals=bsz * L + 1,
            bytes_accessed=bytes_accessed),
    )(text, img, slab)


# ----------------------------- parameter construction -------------------------
def init_params(key):
    ks = jax.random.split(key, 12)
    n = lambda i, shape: (0.05 * jax.random.normal(ks[i], shape)).astype(jnp.float32)
    return {
        # map_text: Linear(word_dim -> embed_dim)
        "w_text": n(0, (DW, D)), "b_text": n(1, (1, D)),
        # PositionalEncodingImageGrid.map: Linear(2 -> feat_dim).  Its weight
        # never reaches the output (the symmetric coord grid has zero mean,
        # start_token=False), only its bias does.
        "w_pos": n(2, (2, DF)), "b_pos": n(3, (1, DF)),
        # map_image: Linear(feat_dim -> embed_dim)
        "w_img": n(4, (DF, D)), "b_img": n(5, (1, D)),
        # FeatureWeightedLayer.params = nn.Parameter(torch.zeros(1))
        "fw_param": jnp.zeros((1, 1), jnp.float32),
        # map_to_embed_1 / map_to_embed_2
        "w1": n(6, (D, D)), "b1": n(7, (1, D)),
        "w2": n(8, (D, D2)), "b2": n(9, (1, D2)),
        # multi_label_class_head: Linear(embed_dim // 2 -> len(labels))
        "w_head": n(10, (D2, L)), "b_head": n(11, (1, L)),
    }


def pack_params(params):
    """Pack every weight/bias into one lane-dense (SLAB_ROWS, 128) f32 slab.

    One operand -> one DMA, instead of 15 tiny (8,128)-padded per-tensor DMAs.
    w_pos is intentionally not packed: its contribution cancels exactly under
    the region mean (zero-mean coord grid), leaving only b_pos.
    """
    slab = jnp.zeros((SLAB_ROWS, LANES), jnp.float32)

    def put(s, row, a):
        a = jnp.asarray(a, jnp.float32)
        return s.at[row:row + a.shape[0], :a.shape[1]].set(a)

    slab = put(slab, R_WSTACK,
               jnp.concatenate([params["w_text"], params["w_img"]], axis=0))
    slab = put(slab, R_B_TEXT, params["b_text"])
    slab = put(slab, R_B_IMG, params["b_img"])
    slab = put(slab, R_B_POS, params["b_pos"])
    slab = put(slab, R_B1, params["b1"])
    slab = put(slab, R_B2, params["b2"])
    slab = put(slab, R_BH, params["b_head"])
    slab = put(slab, R_FW, params["fw_param"])
    slab = put(slab, R_W1, params["w1"])
    slab = put(slab, R_W2, params["w2"])
    slab = put(slab, R_WH, params["w_head"])
    return slab


if __name__ == "__main__":
    key = jax.random.PRNGKey(0)
    pkey, tkey, ikey = jax.random.split(key, 3)
    params = init_params(pkey)
    slab = jax.block_until_ready(pack_params(params))   # built once, outside the jitted forward

    text = jax.random.normal(tkey, (B, T, DW), dtype=jnp.float32)
    text_len = jnp.full((B,), T, dtype=jnp.int32)        # unused by the reference forward
    image = jax.random.normal(ikey, (B, DF, G, G), dtype=jnp.float32)

    probs = weighted_joint_encoder(text, text_len, image, slab)
    probs = jax.block_until_ready(probs)

    assert probs.shape == (B, L) and probs.dtype == jnp.float32
    assert bool(jnp.all(jnp.isfinite(probs)))
    assert bool(jnp.all((probs >= 0.0) & (probs <= 1.0)))
    print("KERNEL_OK")
</pallas_src>

<mosaic_0001>
module attributes {stable_mosaic.version = 11 : i64} {
  func.func @joint_encoder_kernel(%arg0: memref<2x8x32xf32, #tpu.memory_space<vmem>>, %arg1: memref<2x32x16xf32, #tpu.memory_space<vmem>>, %arg2: memref<152x128xf32, #tpu.memory_space<vmem>>, %arg3: memref<2x8xf32, #tpu.memory_space<vmem>>) attributes {dimension_semantics = [], scalar_prefetch = 0 : i64, scratch_operands = 0 : i64, tpu.core_type = #tpu.core_type<tc>} {
    %c0 = arith.constant 0 : index
    %c0_0 = arith.constant 0 : index
    %c0_1 = arith.constant 0 : index
    %0 = vector.load %arg0[%c0, %c0_0, %c0_1] : memref<2x8x32xf32, #tpu.memory_space<vmem>>, vector<2x8x32xf32>
    %cst = arith.constant dense<0.000000e+00> : vector<2x32xf32>
    %1 = vector.multi_reduction <add>, %0, %cst [1] : vector<2x8x32xf32> to vector<2x32xf32>
    %cst_2 = arith.constant 8.000000e+00 : f32
    %2 = vector.broadcast %cst_2 : f32 to vector<2x32xf32>
    %3 = arith.divf %1, %2 : vector<2x32xf32>
    %c0_3 = arith.constant 0 : index
    %c0_4 = arith.constant 0 : index
    %c0_5 = arith.constant 0 : index
    %4 = vector.load %arg1[%c0_3, %c0_4, %c0_5] : memref<2x32x16xf32, #tpu.memory_space<vmem>>, vector<2x32x16xf32>
    %cst_6 = arith.constant dense<0.000000e+00> : vector<2x32xf32>
    %5 = vector.multi_reduction <add>, %4, %cst_6 [2] : vector<2x32x16xf32> to vector<2x32xf32>
    %cst_7 = arith.constant 1.600000e+01 : f32
    %6 = vector.broadcast %cst_7 : f32 to vector<2x32xf32>
    %7 = arith.divf %5, %6 : vector<2x32xf32>
    %c70 = arith.constant 70 : index
    %c0_8 = arith.constant 0 : index
    %8 = vector.load %arg2[%c70, %c0_8] : memref<152x128xf32, #tpu.memory_space<vmem>>, vector<1x1xf32>
    %9 = arith.negf %8 : vector<1x1xf32>
    %10 = math.exp %9 : vector<1x1xf32>
    %cst_9 = arith.constant 1.000000e+00 : f32
    %11 = vector.broadcast %cst_9 : f32 to vector<1x1xf32>
    %12 = arith.addf %11, %10 : vector<1x1xf32>
    %13 = arith.divf %11, %12 : vector<1x1xf32>
    %c66 = arith.constant 66 : index
    %c0_10 = arith.constant 0 : index
    %14 = vector.load %arg2[%c66, %c0_10] : memref<152x128xf32, #tpu.memory_space<vmem>>, vector<1x32xf32>
    %15 = vector.broadcast %13 : vector<1x1xf32> to vector<2x32xf32>
    %16 = arith.mulf %3, %15 : vector<2x32xf32>
    %17 = vector.broadcast %14 : vector<1x32xf32> to vector<2x32xf32>
    %18 = arith.addf %7, %17 : vector<2x32xf32>
    %cst_11 = arith.constant 1.000000e+00 : f32
    %19 = vector.broadcast %cst_11 : f32 to vector<1x1xf32>
    %20 = arith.subf %19, %13 : vector<1x1xf32>
    %21 = vector.broadcast %20 : vector<1x1xf32> to vector<2x32xf32>
    %22 = arith.mulf %18, %21 : vector<2x32xf32>
    %23 = tpu.concatenate %16, %22 in 1 : vector<2x32xf32>, vector<2x32xf32> -> vector<2x64xf32>
    %c0_12 = arith.constant 0 : index
    %c0_13 = arith.constant 0 : index
    %24 = vector.load %arg2[%c0_12, %c0_13] : memref<152x128xf32, #tpu.memory_space<vmem>>, vector<64x32xf32>
    %c64 = arith.constant 64 : index
    %c0_14 = arith.constant 0 : index
    %25 = vector.load %arg2[%c64, %c0_14] : memref<152x128xf32, #tpu.memory_space<vmem>>, vector<1x32xf32>
    %c65 = arith.constant 65 : index
    %c0_15 = arith.constant 0 : index
    %26 = vector.load %arg2[%c65, %c0_15] : memref<152x128xf32, #tpu.memory_space<vmem>>, vector<1x32xf32>
    %cst_16 = arith.constant dense<0.000000e+00> : vector<2x32xf32>
    %27 = tpu.matmul %23, %24, %cst_16 {dimension_numbers = #tpu.dot_dimension_numbers<[1], [0], [0], [1], [0, 0, 1, 1], [], []>} : vector<2x64xf32>, vector<64x32xf32>, vector<2x32xf32> -> vector<2x32xf32>
    %28 = vector.broadcast %13 : vector<1x1xf32> to vector<1x32xf32>
    %29 = arith.mulf %28, %25 : vector<1x32xf32>
    %30 = vector.broadcast %29 : vector<1x32xf32> to vector<2x32xf32>
    %31 = arith.addf %27, %30 : vector<2x32xf32>
    %cst_17 = arith.constant 1.000000e+00 : f32
    %32 = vector.broadcast %cst_17 : f32 to vector<1x1xf32>
    %33 = arith.subf %32, %13 : vector<1x1xf32>
    %34 = vector.broadcast %33 : vector<1x1xf32> to vector<1x32xf32>
    %35 = arith.mulf %34, %26 : vector<1x32xf32>
    %36 = vector.broadcast %35 : vector<1x32xf32> to vector<2x32xf32>
    %37 = arith.addf %31, %36 : vector<2x32xf32>
    %c72 = arith.constant 72 : index
    %c0_18 = arith.constant 0 : index
    %38 = vector.load %arg2[%c72, %c0_18] : memref<152x128xf32, #tpu.memory_space<vmem>>, vector<32x32xf32>
    %c67 = arith.constant 67 : index
    %c0_19 = arith.constant 0 : index
    %39 = vector.load %arg2[%c67, %c0_19] : memref<152x128xf32, #tpu.memory_space<vmem>>, vector<1x32xf32>
    %cst_20 = arith.constant dense<0.000000e+00> : vector<2x32xf32>
    %40 = tpu.matmul %37, %38, %cst_20 {dimension_numbers = #tpu.dot_dimension_numbers<[1], [0], [0], [1], [0, 0, 1, 1], [], []>} : vector<2x32xf32>, vector<32x32xf32>, vector<2x32xf32> -> vector<2x32xf32>
    %41 = vector.broadcast %39 : vector<1x32xf32> to vector<2x32xf32>
    %42 = arith.addf %40, %41 : vector<2x32xf32>
    %cst_21 = arith.constant 0.000000e+00 : f32
    %43 = vector.broadcast %cst_21 : f32 to vector<2x32xf32>
    %44 = arith.cmpf ogt, %42, %43 : vector<2x32xf32>
    %cst_22 = arith.constant 1.000000e-01 : f32
    %45 = vector.broadcast %cst_22 : f32 to vector<2x32xf32>
    %46 = arith.mulf %45, %42 : vector<2x32xf32>
    %47 = arith.select %44, %42, %46 : vector<2x32xi1>, vector<2x32xf32>
    %c104 = arith.constant 104 : index
    %c0_23 = arith.constant 0 : index
    %48 = vector.load %arg2[%c104, %c0_23] : memref<152x128xf32, #tpu.memory_space<vmem>>, vector<32x16xf32>
    %c68 = arith.constant 68 : index
    %c0_24 = arith.constant 0 : index
    %49 = vector.load %arg2[%c68, %c0_24] : memref<152x128xf32, #tpu.memory_space<vmem>>, vector<1x16xf32>
    %cst_25 = arith.constant dense<0.000000e+00> : vector<2x16xf32>
    %50 = tpu.matmul %47, %48, %cst_25 {dimension_numbers = #tpu.dot_dimension_numbers<[1], [0], [0], [1], [0, 0, 1, 1], [], []>} : vector<2x32xf32>, vector<32x16xf32>, vector<2x16xf32> -> vector<2x16xf32>
    %51 = vector.broadcast %49 : vector<1x16xf32> to vector<2x16xf32>
    %52 = arith.addf %50, %51 : vector<2x16xf32>
    %cst_26 = arith.constant 0.000000e+00 : f32
    %53 = vector.broadcast %cst_26 : f32 to vector<2x16xf32>
    %54 = arith.cmpf ogt, %52, %53 : vector<2x16xf32>
    %cst_27 = arith.constant 1.000000e-01 : f32
    %55 = vector.broadcast %cst_27 : f32 to vector<2x16xf32>
    %56 = arith.mulf %55, %52 : vector<2x16xf32>
    %57 = arith.select %54, %52, %56 : vector<2x16xi1>, vector<2x16xf32>
    %c136 = arith.constant 136 : index
    %c0_28 = arith.constant 0 : index
    %58 = vector.load %arg2[%c136, %c0_28] : memref<152x128xf32, #tpu.memory_space<vmem>>, vector<16x8xf32>
    %c69 = arith.constant 69 : index
    %c0_29 = arith.constant 0 : index
    %59 = vector.load %arg2[%c69, %c0_29] : memref<152x128xf32, #tpu.memory_space<vmem>>, vector<1x8xf32>
    %cst_30 = arith.constant dense<0.000000e+00> : vector<2x8xf32>
    %60 = tpu.matmul %57, %58, %cst_30 {dimension_numbers = #tpu.dot_dimension_numbers<[1], [0], [0], [1], [0, 0, 1, 1], [], []>} : vector<2x16xf32>, vector<16x8xf32>, vector<2x8xf32> -> vector<2x8xf32>
    %61 = vector.broadcast %59 : vector<1x8xf32> to vector<2x8xf32>
    %62 = arith.addf %60, %61 : vector<2x8xf32>
    %63 = arith.negf %62 : vector<2x8xf32>
    %64 = math.exp %63 : vector<2x8xf32>
    %cst_31 = arith.constant 1.000000e+00 : f32
    %65 = vector.broadcast %cst_31 : f32 to vector<2x8xf32>
    %66 = arith.addf %65, %64 : vector<2x8xf32>
    %67 = arith.divf %65, %66 : vector<2x8xf32>
    %c0_32 = arith.constant 0 : index
    %c0_33 = arith.constant 0 : index
    %68 = vector.load %arg3[%c0_32, %c0_33] : memref<2x8xf32, #tpu.memory_space<vmem>>, vector<2x8xf32>
    tpu.vector_store %arg3[%c0_32, %c0_33], %67 {strides = array<i32>} : memref<2x8xf32, #tpu.memory_space<vmem>>, vector<2x8xf32>,
    return
  }
}

</mosaic_0001>

<bundles_post_ra>
// kernel: weighted_joint_encoder.1
= control target key start
LH: loop header
LB: loop body
LE: loop exit
PB: predicated region body
PF: predicated region fallthrough
CT: control target
= control target key end

     0   :  { %8 = vsyncpa [#allocation3], 0  ;;  %s922_s0 = inlined_call_operand.vmem [shape: f32[2,8,32], index: 0, kind: input, shape index: {}]   ;;  %s923_s1 = inlined_call_operand.vmem [shape: f32[2,32,16], index: 1, kind: input, shape index: {}]   ;;  %s924_s2 = inlined_call_operand.hbm [shape: f32[152,128], index: 2, kind: input, shape index: {}]   ;;  %s925_s3 = inlined_call_operand.hbm [shape: f32[2,8], index: 3, kind: output, shape index: {}]  }
   0x1   :  { %9 = vsyncpa [#allocation4], 0  ;;  %s790_s12 = smov [#allocation2]   ;;  %s742_s16 = scalar_lea.hbm %s924_s2, 2432 }
   0x2   :  { %s19_s13 = sshll.u32 %s790_s12, 4  ;;  %p743_p0 = scmp.ne.s32.totalorder %s924_s2, %s742_s16  ;;  %s20_s13 = int_to_ptr.vmem [resolvable:$true] %s19_s13 }
   0x3   :  { %p746_p1 = scmp.lt.u32.totalorder %s742_s16, %s924_s2 }
   0x5   :  { %p748_p2 = pnand %p746_p1, %p743_p0 }
   0x7   :  { %751 = shalt.err (!%p748_p2)
}
   0x8   :  { %s752_s21 = scalar_lea.vmem %s20_s13, 2432  ;;  %p757_p4 = scmp.lt.s32.totalorder %s20_s13, %s20_s13 }
   0x9   :  { %p753_p3 = scmp.ne.s32.totalorder %s20_s13, %s752_s21  ;;  %p758_p5 = scmp.lt.s32.totalorder %s752_s21, %s752_s21 }
   0xb   :  { %p759_p6 = por %p758_p5, %p757_p4 }
   0xd   :  { %p760_p7 = pnand %p759_p6, %p753_p3 }
   0xf   :  { %763 = shalt.err (!%p760_p7)
}
  0x10   :  { %s791_s22 = smov 128   ;;  %s792_s23 = smov 8  }
  0x11   :  { %25 = dma.hbm_to_vmem [thread:$0]  %s924_s2, 2432, %s20_s13, [#allocation3], %s791_s22, %s791_s22, %s792_s23  }
  0x12   :  { %786 = dma.done.wait [#allocation3], 2432  }
  0x13   :  { %787 = vsyncadd [#allocation3], 4294964864  ;;  %vm57_vm0 = vcmask 130048   ;;  %v53_v0 = vld [vmem:[%s923_s1 + $0x20] sm:$0xff]  ;;  %v54_v2 = vld [vmem:[%s923_s1 + $0x28] sm:$0xff]  ;;  %v793_v23 = vmov 0  }
  0x14   :  { %v49_v1 = vld [vmem:[%s923_s1] sm:$0xff]  ;;  %v70_v3 = vsel %vm57_vm0, %v53_v0, 0.0  ;;  %v50_v5 = vld [vmem:[%s923_s1 + $0x8] sm:$0xff]  ;;  %v73_v6 = vsel %vm57_vm0, %v54_v2, 0.0  ;;  %v55_v9 = vld [vmem:[%s923_s1 + $0x30] sm:$0xff]  ;;  %733 = vset.pattern.permute.xlu1 %v793_v23  ;;  %732 = vset.pattern.permute.xlu0 %v793_v23  ;;  %v794_v50 = vmov 0.0|0.0  }
  0x15   :  { %v58_v4 = vsel %vm57_vm0, %v49_v1, 0.0  ;;  %71 = vadd.xlane.f32.xlu1 %v70_v3  ;;  %v61_v7 = vsel %vm57_vm0, %v50_v5, 0.0  ;;  %v91_v8 = vld [vmem:[#allocation2 + $0x46] sm:$0x1]  ;;  %v51_v10 = vld [vmem:[%s923_s1 + $0x10] sm:$0xff]  ;;  %v76_v12 = vsel %vm57_vm0, %v55_v9, 0.0  ;;  %693 = vmatprep.subr.bf16.mxu0 %v794_v50 }
  0x16   :  { %59 = vadd.xlane.f32.xlu0 %v58_v4  ;;  %v613_v11 = vmul.f32 -1.442695, %v91_v8  ;;  %v64_v13 = vsel %vm57_vm0, %v51_v10, 0.0  ;;  %v56_v14 = vld [vmem:[%s923_s1 + $0x38] sm:$0xff]  ;;  %v614_v20 = vld [vmem:[#allocation2 + $0x42] ss:$0 sm:$0xff]  ;;  %705 = vmatprep.subr.bf16.mxu1 %v794_v50 }
  0x17   :  { %v52_v15 = vld [vmem:[%s923_s1 + $0x18] sm:$0xff]  ;;  %v79_v16 = vsel %vm57_vm0, %v56_v14, 0.0  ;;  %v237_v46 = vld [vmem:[#allocation2] sm:$0xff]  ;;  %v238_v47 = vld [vmem:[#allocation2 + $0x8] sm:$0xff]  ;;  %vm795_vm1 = vmmov 0   ;;  %v796_v10 = vmov 0.0  }
  0x18   :  { %734 = vpow2.f32 %v613_v11  ;;  %v67_v17 = vsel %vm57_vm0, %v52_v15, 0.0  ;;  %v694_v51 = vpack.c.bf16 %v238_v47, %v237_v46  ;;  %v239_v57 = vld [vmem:[#allocation2 + $0x10] sm:$0xff]  ;;  %v240_v58 = vld [vmem:[#allocation2 + $0x18] sm:$0xff]  ;;  %v241_v2 = vld [vmem:[#allocation2 + $0x20] sm:$0xff]  ;;  %661 = vmatprep.mubr.msk.f32.mxu0 %vm795_vm1, %v796_v10  ;;  %672 = vmatprep.mubr.msk.f32.mxu1 %vm795_vm1, %v796_v10  ;;  %vm31_vm2 = vcmask 261120  }
  0x19   :  { %74 = vadd.xlane.f32.xlu1 %v73_v6  ;;  %v697_v61 = vpack.c.bf16 %v240_v58, %v239_v57  ;;  %v242_v3 = vld [vmem:[#allocation2 + $0x28] sm:$0xff]  ;;  %v244_v8 = vld [vmem:[#allocation2 + $0x38] sm:$0xff]  ;;  %v29_v14 = vld [vmem:[%s922_s0] sm:$0xff]  ;;  %vm199_vm3 = vcmask 392512   ;;  %vm206_vm4 = vcmask 458112   ;;  %vm213_vm5 = vcmask 523712  }
  0x1a   :  { %62 = vadd.xlane.f32.xlu0 %v61_v7  ;;  %695 = vmatpush3.bf16.msra.mxu0 %v694_v51  ;;  %v700_v4 = vpack.c.bf16 %v242_v3, %v241_v2  ;;  %v243_v7 = vld [vmem:[#allocation2 + $0x30] sm:$0xff]  ;;  %v340_v11 = vld [vmem:[#allocation2 + $0x48] sm:$0xff]  ;;  %vm152_vm6 = vcmask 1041409   ;;  %vm256_vm7 = vcmask 523264   ;;  %vm596_vm10 = vcmask 58368  }
  0x1b   :  { %696 = vmatprep.subr.bf16.mxu0 %v794_v50  ;;  %v703_v9 = vpack.c.bf16 %v244_v8, %v243_v7  ;;  %v30_v15 = vld [vmem:[%s922_s0 + $0x8] sm:$0xff]  ;;  %v342_v8 = vld [vmem:[#allocation2 + $0x58] sm:$0xff]  ;;  %s797_s0 = smov [#allocation5]  }
  0x1c   :  { %s604_s19 = sshll.u32 %s797_s0, 4  ;;  %s605_s19 = int_to_ptr.vmem [resolvable:$true] %s604_s19 }
  0x1d   :  { %77 = vadd.xlane.f32.xlu1 %v76_v12  ;;  %v341_v12 = vld [vmem:[#allocation2 + $0x50] sm:$0xff]  ;;  %s764_s20 = scalar_lea.vmem %s605_s19, 32  ;;  %p769_p9 = scmp.lt.s32.totalorder %s605_s19, %s605_s19 }
  0x1e   :  { %65 = vadd.xlane.f32.xlu0 %v64_v13  ;;  %698 = vmatpush3.bf16.msra.mxu0 %v697_v61  ;;  %v706_v13 = vpack.c.bf16 %v341_v12, %v340_v11  ;;  %v245_v12 = vld [vmem:[#allocation2 + $0x40] sm:$0x1]  ;;  %p765_p8 = scmp.ne.s32.totalorder %s605_s19, %s764_s20  ;;  %p770_p10 = scmp.lt.s32.totalorder %s764_s20, %s764_s20 }
  0x1f   :  { %699 = vmatprep.subr.bf16.mxu0 %v794_v50 }
  0x20   :  { %707 = vmatpush3.bf16.msra.mxu1 %v706_v13  ;;  %p771_p11 = por %p770_p10, %p769_p9 }
  0x21   :  { %80 = vadd.xlane.f32.xlu1 %v79_v16  ;;  %708 = vmatprep.subr.bf16.mxu1 %v794_v50  ;;  %v32_v16 = vsel %vm31_vm2, %v29_v14, 0.0  ;;  %v246_v14 = vld [vmem:[#allocation2 + $0x41] sm:$0x1] }
  0x22   :  { %68 = vadd.xlane.f32.xlu0 %v67_v17  ;;  %v735_v18 = vpop.eup %734  ;;  %701 = vmatpush3.bf16.msra.mxu0 %v700_v4  ;;  %v39_v17 = vsel %vm31_vm2, %v30_v15, 0.0  ;;  %p772_p12 = pnand %p771_p11, %p765_p8 }
  0x23   :  { %v95_v19 = vadd.f32 1.0, %v735_v18  ;;  %702 = vmatprep.subr.bf16.mxu0 %v794_v50  ;;  %v33_v18 = vrot.slane %v32_v16, 4 }
  0x25   :  { %736 = vrcp.f32 %v95_v19  ;;  %v40_v19 = vrot.slane %v39_v17, 4 }
  0x26   :  { %704 = vmatpush3.bf16.msra.mxu0 %v703_v9  ;;  %v343_v9 = vld [vmem:[#allocation2 + $0x60] sm:$0xff] }
  0x27   :  { %717 = vmatprep.subr.bf16.mxu0 %v794_v50  ;;  %v709_v11 = vpack.c.bf16 %v343_v9, %v342_v8 }
  0x29   :  { %710 = vmatpush3.bf16.msra.mxu1 %v709_v11 }
  0x2a   :  { %711 = vmatprep.subr.bf16.mxu1 %v794_v50 }
  0x2f   :  { %v862_v21 = vpop.eup %736 }
  0x30   :  { %720 = vpush %v862_v21  ;;  %v137_v22 = vsub.f32 1.0, %v862_v21 }
  0x32   :  { %115 = vbcast.lane.b32.xlu1 %v614_v20, 264  ;;  %722 = vpush %v137_v22 }
  0x36   :  { %119 = vbcast.lane.b32.xlu1 %v614_v20, 272 }
  0x38   :  { %111 = vbcast.lane.b32.xlu0 %v614_v20, 256 }
  0x3a   :  { %123 = vbcast.lane.b32.xlu1 %v614_v20, 280  ;;  %v34_v20 = vadd.f32 %v33_v18, %v32_v16 }
  0x61   :  { %s868_s1 = spop %720 }
  0x62   :  { %v101_v46 = vstv %s868_s1 }
  0x63   :  { %s723_s14 = spop %722 }
  0x64   :  { %v140_v36 = vstv %s723_s14 }
  0xa2   :  { %v72_v24 = vpop.xlane.xlu1 %71 }
  0xa3   :  { %v60_v25 = vpop.xlane.xlu0 %59  ;;  %v87_v37 = vmul.f32 0.0625, %v72_v24  ;;  %v187_v24 = vlaneseq }
  0xa4   :  { %v83_v32 = vmul.f32 0.0625, %v60_v25 }
  0xa6   :  { %v75_v26 = vpop.xlane.xlu1 %74 }
  0xa7   :  { %v63_v27 = vpop.xlane.xlu0 %62  ;;  %v88_v38 = vmul.f32 0.0625, %v75_v26 }
  0xa8   :  { %v84_v33 = vmul.f32 0.0625, %v63_v27  ;;  %v188_v27 = vand.u32 127, %v187_v24 }
  0xaa   :  { %v78_v28 = vpop.xlane.xlu1 %77 }
  0xab   :  { %v66_v29 = vpop.xlane.xlu0 %65  ;;  %v89_v48 = vmul.f32 0.0625, %v78_v28 }
  0xac   :  { %v85_v49 = vmul.f32 0.0625, %v66_v29 }
  0xae   :  { %v81_v30 = vpop.xlane.xlu1 %80 }
  0xaf   :  { %v69_v31 = vpop.xlane.xlu0 %68  ;;  %v90_v59 = vmul.f32 0.0625, %v81_v30 }
  0xb0   :  { %v86_v60 = vmul.f32 0.0625, %v69_v31 }
  0xb2   :  { %v116_v34 = vpop.permute.xlu1 %115 }
  0xb3   :  { %v112_v35 = vpop.permute.xlu0 %111  ;;  %v130_v39 = vadd.f32 %v116_v34, %v84_v33  ;;  %v134_v41 = vadd.f32 %v116_v34, %v88_v38  ;;  %v194_v33 = vadd.s32 4294967256, %v188_v27  ;;  %v189_v34 = vadd.s32 4294967264, %v188_v27 }
  0xb4   :  { %v129_v40 = vadd.f32 %v112_v35, %v83_v32  ;;  %v133_v42 = vadd.f32 %v112_v35, %v87_v37  ;;  %v892_v32 = vshrl.u32 %v187_v24, 7  ;;  %v201_v35 = vadd.s32 4294967248, %v188_v27 }
  0xb5   :  { %v143_v43 = vmul.f32 %v140_v36, %v130_v39  ;;  %v147_v55 = vmul.f32 %v140_v36, %v134_v41 }
  0xb6   :  { %v142_v44 = vmul.f32 %v140_v36, %v129_v40  ;;  %v120_v45 = vpop.permute.xlu1 %119  ;;  %v146_v54 = vmul.f32 %v140_v36, %v133_v42  ;;  %v208_v40 = vadd.s32 4294967240, %v188_v27  ;;  %v197_v41 = vsub.s32 %v194_v33, %v892_v32 }
  0xb7   :  { %167 = vperm.xlu1 %733, %v143_v43   ;;  %v131_v52 = vadd.f32 %v120_v45, %v85_v49  ;;  %v135_v53 = vadd.f32 %v120_v45, %v89_v48  ;;  %v192_v42 = vsub.s32 %v189_v34, %v892_v32  ;;  %v204_v43 = vsub.s32 %v201_v35, %v892_v32 }
  0xb8   :  { %164 = vperm.xlu0 %732, %v142_v44   ;;  %v211_v49 = vsub.s32 %v208_v40, %v892_v32 }
  0xb9   :  { %v144_v62 = vmul.f32 %v140_v36, %v131_v52  ;;  %v148_v63 = vmul.f32 %v140_v36, %v135_v53 }
  0xba   :  { %v124_v56 = vpop.permute.xlu1 %123 }
  0xbb   :  { %176 = vperm.xlu1 %733, %v146_v54   ;;  %v132_v0 = vadd.f32 %v124_v56, %v86_v60  ;;  %v136_v1 = vadd.f32 %v124_v56, %v90_v59 }
  0xbc   :  { %179 = vperm.xlu0 %732, %v147_v55  }
  0xbd   :  { %v145_v5 = vmul.f32 %v140_v36, %v132_v0  ;;  %v149_v6 = vmul.f32 %v140_v36, %v136_v1 }
  0xbf   :  { %170 = vperm.xlu1 %733, %v144_v62  }
  0xc0   :  { %182 = vperm.xlu0 %732, %v148_v63  }
  0xc3   :  { %173 = vperm.xlu1 %733, %v145_v5  }
  0xc4   :  { %185 = vperm.xlu0 %732, %v149_v6  }
  0xc7   :  { %248 = vperm.xlu1 %733, %v862_v21   ;;  %v41_v21 = vadd.f32 %v40_v19, %v39_v17  ;;  %v254_v17 = vsub.s32 0, %v892_v32 }
  0xc8   :  { %331 = vperm.xlu0 %732, %v137_v22   ;;  %v35_v22 = vrot.slane %v34_v20, 2 }
  0xc9   :  { %v42_v23 = vrot.slane %v41_v21, 2 }
  0xca   :  { %v36_v25 = vadd.f32 %v35_v22, %v34_v20  ;;  %v425_v20 = vld [vmem:[#allocation2 + $0x68] sm:$0xff] }
  0xcb   :  { %v43_v26 = vadd.f32 %v42_v23, %v41_v21  ;;  %v426_v21 = vld [vmem:[#allocation2 + $0x70] sm:$0xff] }
  0xcc   :  { %v37_v28 = vrot.slane %v36_v25, 1 }
  0xcd   :  { %v44_v29 = vrot.slane %v43_v26, 1 }
  0xce   :  { %v38_v36 = vadd.f32 %v37_v28, %v36_v25  ;;  %v427_v28 = vld [vmem:[#allocation2 + $0x78] sm:$0xff] }
  0xcf   :  { %v45_v37 = vadd.f32 %v44_v29, %v43_v26  ;;  %v712_v26 = vpack.c.bf16 %v426_v21, %v425_v20  ;;  %v428_v29 = vld [vmem:[#allocation2 + $0x80] sm:$0xff] }
  0xd0   :  { %v47_v44 = vmul.f32 0.125, %v38_v36 }
  0xd1   :  { %v48_v45 = vmul.f32 0.125, %v45_v37  ;;  %v510_v37 = vld [vmem:[#allocation2 + $0x88] sm:$0xff] }
  0xd2   :  { %v103_v57 = vmul.f32 %v101_v46, %v47_v44  ;;  %v620_v44 = vld [vmem:[#allocation2 + $0x45] ss:$0 sm:$0xff] }
  0xd3   :  { %v104_v58 = vmul.f32 %v101_v46, %v48_v45 }
  0xd5   :  { %v153_v5 = vsel %vm152_vm6, %v104_v58, %v103_v57 }
 0x136   :  { %v168_v30 = vpop.permute.xlu1 %167 }
 0x137   :  { %v165_v31 = vpop.permute.xlu0 %164  ;;  %v198_v51 = vrot.slane %v168_v30, %v197_v41  ;;  %v715_v30 = vpack.c.bf16 %v428_v29, %v427_v28 }
 0x138   :  { %v193_v52 = vrot.slane %v165_v31, %v192_v42  ;;  %v616_v31 = vld [vmem:[#allocation2 + $0x43] ss:$0 sm:$0xff] }
 0x13a   :  { %v177_v38 = vpop.permute.xlu1 %176  ;;  %v200_v61 = vsel %vm199_vm3, %v198_v51, %v193_v52 }
 0x13b   :  { %v180_v39 = vpop.permute.xlu0 %179  ;;  %v218_v53 = vrot.slane %v177_v38, %v192_v42  ;;  %v511_v38 = vld [vmem:[#allocation2 + $0x90] sm:$0xff] }
 0x13c   :  { %v222_v54 = vrot.slane %v180_v39, %v197_v41  ;;  %v718_v39 = vpack.c.bf16 %v511_v38, %v510_v37 }
 0x13e   :  { %v171_v47 = vpop.permute.xlu1 %170  ;;  %v223_v62 = vsel %vm199_vm3, %v222_v54, %v218_v53 }
 0x13f   :  { %v183_v48 = vpop.permute.xlu0 %182  ;;  %v205_v55 = vrot.slane %v171_v47, %v204_v43 }
 0x140   :  { %v227_v56 = vrot.slane %v183_v48, %v204_v43 }
 0x141   :  { %v207_v1 = vsel %vm206_vm4, %v205_v55, %v200_v61 }
 0x142   :  { %v174_v59 = vpop.permute.xlu1 %173  ;;  %v228_v2 = vsel %vm206_vm4, %v227_v56, %v223_v62 }
 0x143   :  { %v186_v60 = vpop.permute.xlu0 %185  ;;  %v212_v63 = vrot.slane %v174_v59, %v211_v49 }
 0x144   :  { %v232_v0 = vrot.slane %v186_v60, %v211_v49 }
 0x145   :  { %v214_v3 = vsel %vm213_vm5, %v212_v63, %v207_v1 }
 0x146   :  { %v233_v4 = vsel %vm213_vm5, %v232_v0, %v228_v2  ;;  %v249_v13 = vpop.permute.xlu1 %248 }
 0x147   :  { %v234_v6 = vsel %vm152_vm6, %v233_v4, %v214_v3  ;;  %v332_v15 = vpop.permute.xlu0 %331  ;;  %v251_v16 = vmul.f32 %v249_v13, %v245_v12 }
 0x148   :  { %v236_v7 = vsel %vm31_vm2, %v153_v5, %v234_v6  ;;  %v334_v18 = vmul.f32 %v332_v15, %v246_v14 }
 0x149   :  { %662 = vmatmul.mubr.msk.f32.vlgmr.msra.gmra.mrb[0].mxu0 %vm256_vm7, %v236_v7  ;;  %v255_v19 = vrot.slane %v251_v16, %v254_v17 }
 0x14a   :  { %690 = vmatprep.mubr.msk.f32.mxu0 %vm795_vm1, %v796_v10  ;;  %v338_v23 = vrot.slane %v334_v18, %v254_v17  ;;  %719 = vmatpush3.bf16.msra.mxu0 %v718_v39 }
 0x21c   :  { %v326_v22 = vpop.f32.mrb[0].mxu0 }
 0x21d   :  { %v327_v24 = vadd.f32 %v326_v22, %v255_v19  ;;  %v663_v25 = vpop.f32.mrb[1].mxu0 }
 0x21f   :  { %v339_v27 = vadd.f32 %v338_v23, %v327_v24 }
 0x221   :  { %673 = vmatmul.mubr.msk.f32.vlgmr.msra.gmra.mrb[0].mxu1 %vm31_vm2, %v339_v27 }
 0x222   :  { %713 = vmatpush3.bf16.msra.mxu1 %v712_v26  ;;  %683 = vmatprep.mubr.msk.f32.mxu1 %vm795_vm1, %v796_v10  ;;  %v618_v10 = vld [vmem:[#allocation2 + $0x44] ss:$0 sm:$0xff] }
 0x223   :  { %714 = vmatprep.subr.bf16.mxu1 %v794_v50 }
 0x226   :  { %716 = vmatpush3.bf16.msra.mxu1 %v715_v30 }
 0x2f4   :  { %v418_v32 = vpop.f32.mrb[0].mxu1 }
 0x2f5   :  { %v419_v33 = vadd.f32 %v616_v31, %v418_v32  ;;  %v674_v34 = vpop.f32.mrb[1].mxu1 }
 0x2f7   :  { %vm422_vm8 = vcmp.gt.f32.partialorder %v419_v33, 0.0  ;;  %v423_v35 = vmul.f32 0.1, %v419_v33 }
 0x2f9   :  { %v424_v36 = vsel %vm422_vm8, %v419_v33, %v423_v35 }
 0x2fa   :  { %684 = vmatmul.mubr.msk.f32.vlgmr.msra.gmra.mrb[2].mxu1 %vm31_vm2, %v424_v36 }
 0x3cd   :  { %v503_v40 = vpop.f32.mrb[2].mxu1 }
 0x3ce   :  { %v504_v50 = vadd.f32 %v618_v10, %v503_v40  ;;  %v685_v41 = vpop.f32.mrb[3].mxu1 }
 0x3d0   :  { %vm507_vm9 = vcmp.gt.f32.partialorder %v504_v50, 0.0  ;;  %v508_v42 = vmul.f32 0.1, %v504_v50 }
 0x3d2   :  { %v509_v43 = vsel %vm507_vm9, %v504_v50, %v508_v42 }
 0x3d3   :  { %691 = vmatmul.mubr.msk.f32.vlgmr.msra.gmra.mrb[2].mxu0 %vm57_vm0, %v509_v43 }
 0x4a6   :  { %v586_v45 = vpop.f32.mrb[2].mxu0 }
 0x4a7   :  { %v587_v46 = vadd.f32 %v620_v44, %v586_v45  ;;  %v692_v47 = vpop.f32.mrb[3].mxu0 }
 0x4a9   :  { %v622_v48 = vmul.f32 -1.442695, %v587_v46 }
 0x4ab   :  { %738 = vpow2.f32 %v622_v48 }
 0x4b5   :  { %v739_v49 = vpop.eup %738 }
 0x4b6   :  { %v593_v51 = vadd.f32 1.0, %v739_v49 }
 0x4b8   :  { %740 = vrcp.f32 %v593_v51 }
 0x4c2   :  { %v741_v52 = vpop.eup %740 }
 0x4c3   :  { %597 = vst.msk [vmem:[#allocation5] sm:$0x3] %vm596_vm10, %v741_v52 }
 0x4c4   :  { %775 = shalt.err (!%p772_p12)
}
 0x4c5   :  { %s776_s23 = scalar_lea.hbm %s925_s3, 32 }
 0x4c6   :  { %p777_p13 = scmp.ne.s32.totalorder %s925_s3, %s776_s23  ;;  %p780_p0 = scmp.lt.u32.totalorder %s776_s23, %s925_s3 }
 0x4c8   :  { %p782_p1 = pnand %p780_p0, %p777_p13 }
 0x4ca   :  { %785 = shalt.err (!%p782_p1)
}
 0x4cb   :  { %607 = dma.vmem_to_hbm [thread:$0]  %s605_s19, 32, %s925_s3, [#allocation4]  }
 0x4cc   :  { %788 = dma.done.wait [#allocation4], 32  }
 0x4cd   :  { %789 = vsyncadd [#allocation4], 4294967264 }
 0x4ce   :  { %611 = vsyncpa [#allocation3], 1 }
 0x4cf   :  { %612 = vsyncpa [#allocation4], 1 }

</bundles_post_ra>
